<compile_context>
chip_gen: v5e
topology: v5e:2x2
jax: 0.10.0
libtpu: 0.0.40
codegen_flags: <defaults>
</compile_context>

<pallas_src>
import functools

import jax
import jax.numpy as jnp
from jax import lax
from jax.experimental import pallas as pl
from jax.experimental.pallas import tpu as pltpu

EPS = 1e-5


def _down_conv_relu_stats_kernel(xc_ref, w_ref, b_ref, y_ref, st_ref, *,
                                 ipb, kh, kw, oh, ow, rrows):
    """Fused stride-2 'same' conv + bias + ReLU + per-image BN partial stats.

    xc_ref : (ipb, kw, Cin, Lx)   bf16  column-phase / row-parity split input
    w_ref  : (kh*kw, Cout, Cin)   bf16  per-tap weight matrices
    b_ref  : (Cout, 1)            f32
    y_ref  : (ipb, Cout, OH*OW)   bf16  pre-BN activations
    st_ref : (ipb, Cout, 2)       f32   [:, :, 0]=sum, [:, :, 1]=centered SSQ
    """
    l = oh * ow
    bias = b_ref[...]                                   # (Cout, 1)
    cout = y_ref.shape[1]
    for b in range(ipb):                                # static unroll
        acc = jnp.zeros((cout, l), jnp.float32)
        for ki in range(kh):
            # tap (ki, kj) is a contiguous lane range of the parity-split input
            off = (ki % 2) * rrows * ow + (ki // 2) * ow
            for kj in range(kw):
                w_t = w_ref[ki * kw + kj]               # (Cout, Cin) bf16
                rhs = xc_ref[b, kj, :, off:off + l]     # (Cin, OH*OW) bf16
                acc = acc + jnp.dot(w_t, rhs,
                                    preferred_element_type=jnp.float32)
        y = jnp.maximum(acc + bias, 0.0)                # (Cout, OH*OW) f32
        # per-image partial statistics (count == l exactly; no padding, no mask)
        s = jnp.sum(y, axis=1, keepdims=True)           # (Cout, 1)
        mu = s * (1.0 / l)
        m2 = jnp.sum((y - mu) * (y - mu), axis=1, keepdims=True)
        y_ref[b] = y.astype(y_ref.dtype)
        st_ref[b, :, 0:1] = s
        st_ref[b, :, 1:2] = m2


def _pick_images_per_block(n, per_image_bytes, fixed_bytes, budget_bytes,
                           max_unroll=8):
    """Largest divisor of n (capped for unroll) fitting the VMEM budget."""
    best = 1
    for d in range(1, min(n, max_unroll) + 1):
        if n % d:
            continue
        if fixed_bytes + d * per_image_bytes <= budget_bytes:
            best = d
    return best


def unet_down_forward(x_nchw, conv_w, conv_b, bn_gamma, bn_beta):
    """x_nchw: (N, Cin, H, W) f32; conv_w: (Cout, Cin, KH, KW) f32."""
    n, cin, h, w = x_nchw.shape
    cout, cin2, kh, kw = conv_w.shape
    assert cin2 == cin
    # TODO(synk): even-sized kernels use asymmetric ZeroPad2d in the module;
    # only the odd-kernel ('same', stride 2) path is implemented here.
    assert kh % 2 == 1 and kw % 2 == 1, "even kernel shapes not supported"
    ph, pw = (kh - 1) // 2, (kw - 1) // 2
    oh, ow = (h - 1) // 2 + 1, (w - 1) // 2 + 1        # PyTorch 'same' + stride 2
    l = oh * ow
    rrows = oh + ph                                     # rows per parity phase
    lx = 2 * rrows * ow

    # ---- cheap input relayout (the only wrapper-side data movement) ---------
    # Pad to exactly 2*(oh+ph) x 2*(ow+pw) (extra row/col only for odd H/W is
    # never read by a valid tap), cast to bf16, then split columns by kernel
    # column index (stride-2 slice) and rows by parity, so that every tap
    # (ki, kj) is a contiguous flat slice per (image, cin) inside the kernel.
    hp_t, wp_t = 2 * (oh + ph), 2 * (ow + pw)
    xpad = jnp.pad(x_nchw, ((0, 0), (0, 0),
                            (ph, hp_t - h - ph), (pw, wp_t - w - pw))
                   ).astype(jnp.bfloat16)               # (N, Cin, hp_t, wp_t)
    cols = []
    for j in range(kw):
        c = xpad[:, :, :, j:j + 2 * ow:2]               # (N, Cin, hp_t, OW)
        c = c.reshape(n, cin, rrows, 2, ow)             # padded row 2r+p -> (r,p)
        c = c.transpose(0, 1, 3, 2, 4)                  # (N, Cin, 2, rrows, OW)
        cols.append(c.reshape(n, cin, lx))
    xc = jnp.stack(cols, axis=1)                        # (N, kw, Cin, Lx) bf16

    w_taps = conv_w.transpose(2, 3, 0, 1).reshape(kh * kw, cout,
                                                  cin).astype(jnp.bfloat16)
    b_col = conv_b.reshape(cout, 1).astype(jnp.float32)

    # ---- tile sizing: images per grid step from a VMEM budget ---------------
    # Conservative budget fits every generation (v7x: 64 MiB physical, 32 MiB
    # default scoped; v5e: 16 MiB default scoped -> raised via vmem_limit_bytes).
    per_img = 2 * (kw * cin * lx * 2 + cout * l * 2 + cout * 2 * 4)  # dbl-buffered
    fixed = 4 * cout * l * 4 + kh * kw * cout * cin * 2 + 4096       # f32 acc etc.
    ipb = _pick_images_per_block(n, per_img, fixed, budget_bytes=20 * 2**20)
    nsteps = n // ipb
    # TODO(synk): intra-image row-band tiling for very large single images
    # (where even ipb=1 exceeds the VMEM budget).

    kernel = functools.partial(_down_conv_relu_stats_kernel,
                               ipb=ipb, kh=kh, kw=kw, oh=oh, ow=ow, rrows=rrows)
    y_t, stats = pl.pallas_call(
        kernel,
        grid=(nsteps,),
        in_specs=[
            pl.BlockSpec((ipb, kw, cin, lx), lambda i: (i, 0, 0, 0)),
            pl.BlockSpec((kh * kw, cout, cin), lambda i: (0, 0, 0)),
            pl.BlockSpec((cout, 1), lambda i: (0, 0)),
        ],
        out_specs=[
            pl.BlockSpec((ipb, cout, l), lambda i: (i, 0, 0)),
            pl.BlockSpec((ipb, cout, 2), lambda i: (i, 0, 0)),
        ],
        out_shape=[
            jax.ShapeDtypeStruct((n, cout, l), jnp.bfloat16),
            jax.ShapeDtypeStruct((n, cout, 2), jnp.float32),
        ],
        compiler_params=pltpu.CompilerParams(
            dimension_semantics=("parallel",),       # megacore on v7x
            vmem_limit_bytes=32 * 2**20),            # explicit (v5e default 16 MiB)
    )(xc, w_taps, b_col)

    # ---- Chan/Welford combine of per-image partials (Cout-sized math) -------
    s = stats[:, :, 0]                               # (N, Cout) per-image sums
    m2 = stats[:, :, 1]                              # (N, Cout) centered SSQ
    total = n * l
    mean_img = s / l                                 # per-image means
    mu = jnp.sum(s, axis=0) / total                  # (Cout,) global mean
    m2_tot = jnp.sum(m2, axis=0) + l * jnp.sum((mean_img - mu) ** 2, axis=0)
    var = m2_tot / total                             # biased variance (BN train)
    inv = lax.rsqrt(var + EPS)
    scale = bn_gamma * inv
    shift = bn_beta - mu * scale
    # TODO(synk): running_mean / running_var buffer updates (module state) are
    # not produced; only the forward output is computed.

    # ---- BN apply fused by XLA with the final reshape ------------------------
    # y_t is already (N, Cout, OH*OW): no transpose and no second Pallas pass.
    out = (y_t.astype(jnp.float32) * scale[None, :, None]
           + shift[None, :, None]).reshape(n, cout, oh, ow)
    return out


def reference_forward(x_nchw, conv_w, conv_b, bn_gamma, bn_beta):
    """Pure-JAX f32 reference matching PyTorch semantics (odd kernel, even H/W)."""
    kh = conv_w.shape[2]
    p = (kh - 1) // 2
    y = lax.conv_general_dilated(
        x_nchw, conv_w, window_strides=(2, 2), padding=((p, p), (p, p)),
        dimension_numbers=("NCHW", "OIHW", "NCHW"))
    y = y + conv_b[None, :, None, None]
    y = jnp.maximum(y, 0.0)
    mean = jnp.mean(y, axis=(0, 2, 3), keepdims=True)
    var = jnp.mean((y - mean) ** 2, axis=(0, 2, 3), keepdims=True)
    y = (y - mean) * lax.rsqrt(var + EPS)
    return y * bn_gamma[None, :, None, None] + bn_beta[None, :, None, None]


if __name__ == "__main__":
    # Module config: input_size=4, output_size=8, shape=3 (odd -> padding=1),
    # arg_padding='same', activation='relu', batchnorm=True.
    N, CIN, H, W = 2, 4, 16, 16
    COUT, KH, KW = 8, 3, 3

    key = jax.random.PRNGKey(0)
    kx, kw_, kb = jax.random.split(key, 3)

    x = jax.random.normal(kx, (N, CIN, H, W), dtype=jnp.float32)

    # kaiming_normal_ (fan_in, relu gain): std = sqrt(2 / (Cin*KH*KW))
    fan_in = CIN * KH * KW
    conv_w = jax.random.normal(kw_, (COUT, CIN, KH, KW), jnp.float32) * jnp.sqrt(
        2.0 / fan_in)
    # default Conv2d bias init: U(-1/sqrt(fan_in), 1/sqrt(fan_in))
    bound = 1.0 / jnp.sqrt(fan_in)
    conv_b = jax.random.uniform(kb, (COUT,), jnp.float32, -bound, bound)
    # BatchNorm2d default affine params
    bn_gamma = jnp.ones((COUT,), jnp.float32)
    bn_beta = jnp.zeros((COUT,), jnp.float32)

    out = unet_down_forward(x, conv_w, conv_b, bn_gamma, bn_beta)
    out = jax.block_until_ready(out)

    ref = reference_forward(x, conv_w, conv_b, bn_gamma, bn_beta)
    assert out.shape == (N, COUT, H // 2, W // 2), out.shape
    # bf16 MXU inputs + bf16 pre-BN activations -> loose tolerance vs f32 ref
    max_err = float(jnp.max(jnp.abs(out - ref)))
    mean_err = float(jnp.mean(jnp.abs(out - ref)))
    assert max_err < 1e-1 and mean_err < 1.5e-2, (max_err, mean_err)

    print("KERNEL_OK")
</pallas_src>

<mosaic_0001>
module attributes {stable_mosaic.version = 11 : i64} {
  func.func @_down_conv_relu_stats_kernel(%arg0: i32, %arg1: memref<2x3x4x144xbf16, #tpu.memory_space<vmem>>, %arg2: memref<9x8x4xbf16, #tpu.memory_space<vmem>>, %arg3: memref<8x1xf32, #tpu.memory_space<vmem>>, %arg4: memref<2x8x64xbf16, #tpu.memory_space<vmem>>, %arg5: memref<2x8x2xf32, #tpu.memory_space<vmem>>) attributes {dimension_semantics = [#tpu.dimension_semantics<parallel>], iteration_bounds = array<i64: 1>, scalar_prefetch = 0 : i64, scratch_operands = 0 : i64, tpu.core_type = #tpu.core_type<tc>, window_params = [{transform_indices = @transform_0, window_bounds = array<i64: 2, 3, 4, 144>}, {pipeline_mode = #tpu.pipeline_mode<synchronous>, transform_indices = @transform_1, window_bounds = array<i64: 9, 8, 4>}, {pipeline_mode = #tpu.pipeline_mode<synchronous>, transform_indices = @transform_2, window_bounds = array<i64: 8, 1>}, {transform_indices = @transform_3, window_bounds = array<i64: 2, 8, 64>}, {transform_indices = @transform_4, window_bounds = array<i64: 2, 8, 2>}]} {
    %c0 = arith.constant 0 : index
    %c0_0 = arith.constant 0 : index
    %0 = vector.load %arg3[%c0, %c0_0] : memref<8x1xf32, #tpu.memory_space<vmem>>, vector<8x1xf32>
    %cst = arith.constant 0.000000e+00 : f32
    %1 = vector.broadcast %cst : f32 to vector<8x64xf32>
    %c0_1 = arith.constant 0 : index
    %c0_2 = arith.constant 0 : index
    %c0_3 = arith.constant 0 : index
    %2 = vector.load %arg2[%c0_1, %c0_2, %c0_3] : memref<9x8x4xbf16, #tpu.memory_space<vmem>>, vector<1x8x4xbf16>
    %3 = vector.shape_cast %2 : vector<1x8x4xbf16> to vector<8x4xbf16>
    %c0_4 = arith.constant 0 : index
    %c0_5 = arith.constant 0 : index
    %c0_6 = arith.constant 0 : index
    %c0_7 = arith.constant 0 : index
    %4 = vector.load %arg1[%c0_4, %c0_5, %c0_6, %c0_7] : memref<2x3x4x144xbf16, #tpu.memory_space<vmem>>, vector<1x1x4x64xbf16>
    %5 = vector.shape_cast %4 : vector<1x1x4x64xbf16> to vector<4x64xbf16>
    %cst_8 = arith.constant dense<0.000000e+00> : vector<8x64xf32>
    %6 = tpu.matmul %3, %5, %cst_8 {dimension_numbers = #tpu.dot_dimension_numbers<[1], [0], [0], [1], [0, 0, 1, 1], [], []>} : vector<8x4xbf16>, vector<4x64xbf16>, vector<8x64xf32> -> vector<8x64xf32>
    %7 = arith.addf %1, %6 : vector<8x64xf32>
    %c1 = arith.constant 1 : index
    %c0_9 = arith.constant 0 : index
    %c0_10 = arith.constant 0 : index
    %8 = vector.load %arg2[%c1, %c0_9, %c0_10] : memref<9x8x4xbf16, #tpu.memory_space<vmem>>, vector<1x8x4xbf16>
    %9 = vector.shape_cast %8 : vector<1x8x4xbf16> to vector<8x4xbf16>
    %c0_11 = arith.constant 0 : index
    %c1_12 = arith.constant 1 : index
    %c0_13 = arith.constant 0 : index
    %c0_14 = arith.constant 0 : index
    %10 = vector.load %arg1[%c0_11, %c1_12, %c0_13, %c0_14] : memref<2x3x4x144xbf16, #tpu.memory_space<vmem>>, vector<1x1x4x64xbf16>
    %11 = vector.shape_cast %10 : vector<1x1x4x64xbf16> to vector<4x64xbf16>
    %cst_15 = arith.constant dense<0.000000e+00> : vector<8x64xf32>
    %12 = tpu.matmul %9, %11, %cst_15 {dimension_numbers = #tpu.dot_dimension_numbers<[1], [0], [0], [1], [0, 0, 1, 1], [], []>} : vector<8x4xbf16>, vector<4x64xbf16>, vector<8x64xf32> -> vector<8x64xf32>
    %13 = arith.addf %7, %12 : vector<8x64xf32>
    %c2 = arith.constant 2 : index
    %c0_16 = arith.constant 0 : index
    %c0_17 = arith.constant 0 : index
    %14 = vector.load %arg2[%c2, %c0_16, %c0_17] : memref<9x8x4xbf16, #tpu.memory_space<vmem>>, vector<1x8x4xbf16>
    %15 = vector.shape_cast %14 : vector<1x8x4xbf16> to vector<8x4xbf16>
    %c0_18 = arith.constant 0 : index
    %c2_19 = arith.constant 2 : index
    %c0_20 = arith.constant 0 : index
    %c0_21 = arith.constant 0 : index
    %16 = vector.load %arg1[%c0_18, %c2_19, %c0_20, %c0_21] : memref<2x3x4x144xbf16, #tpu.memory_space<vmem>>, vector<1x1x4x64xbf16>
    %17 = vector.shape_cast %16 : vector<1x1x4x64xbf16> to vector<4x64xbf16>
    %cst_22 = arith.constant dense<0.000000e+00> : vector<8x64xf32>
    %18 = tpu.matmul %15, %17, %cst_22 {dimension_numbers = #tpu.dot_dimension_numbers<[1], [0], [0], [1], [0, 0, 1, 1], [], []>} : vector<8x4xbf16>, vector<4x64xbf16>, vector<8x64xf32> -> vector<8x64xf32>
    %19 = arith.addf %13, %18 : vector<8x64xf32>
    %c3 = arith.constant 3 : index
    %c0_23 = arith.constant 0 : index
    %c0_24 = arith.constant 0 : index
    %20 = vector.load %arg2[%c3, %c0_23, %c0_24] : memref<9x8x4xbf16, #tpu.memory_space<vmem>>, vector<1x8x4xbf16>
    %21 = vector.shape_cast %20 : vector<1x8x4xbf16> to vector<8x4xbf16>
    %c0_25 = arith.constant 0 : index
    %c0_26 = arith.constant 0 : index
    %c0_27 = arith.constant 0 : index
    %c72 = arith.constant 72 : index
    %22 = vector.load %arg1[%c0_25, %c0_26, %c0_27, %c72] : memref<2x3x4x144xbf16, #tpu.memory_space<vmem>>, vector<1x1x4x64xbf16>
    %23 = vector.shape_cast %22 : vector<1x1x4x64xbf16> to vector<4x64xbf16>
    %cst_28 = arith.constant dense<0.000000e+00> : vector<8x64xf32>
    %24 = tpu.matmul %21, %23, %cst_28 {dimension_numbers = #tpu.dot_dimension_numbers<[1], [0], [0], [1], [0, 0, 1, 1], [], []>} : vector<8x4xbf16>, vector<4x64xbf16>, vector<8x64xf32> -> vector<8x64xf32>
    %25 = arith.addf %19, %24 : vector<8x64xf32>
    %c4 = arith.constant 4 : index
    %c0_29 = arith.constant 0 : index
    %c0_30 = arith.constant 0 : index
    %26 = vector.load %arg2[%c4, %c0_29, %c0_30] : memref<9x8x4xbf16, #tpu.memory_space<vmem>>, vector<1x8x4xbf16>
    %27 = vector.shape_cast %26 : vector<1x8x4xbf16> to vector<8x4xbf16>
    %c0_31 = arith.constant 0 : index
    %c1_32 = arith.constant 1 : index
    %c0_33 = arith.constant 0 : index
    %c72_34 = arith.constant 72 : index
    %28 = vector.load %arg1[%c0_31, %c1_32, %c0_33, %c72_34] : memref<2x3x4x144xbf16, #tpu.memory_space<vmem>>, vector<1x1x4x64xbf16>
    %29 = vector.shape_cast %28 : vector<1x1x4x64xbf16> to vector<4x64xbf16>
    %cst_35 = arith.constant dense<0.000000e+00> : vector<8x64xf32>
    %30 = tpu.matmul %27, %29, %cst_35 {dimension_numbers = #tpu.dot_dimension_numbers<[1], [0], [0], [1], [0, 0, 1, 1], [], []>} : vector<8x4xbf16>, vector<4x64xbf16>, vector<8x64xf32> -> vector<8x64xf32>
    %31 = arith.addf %25, %30 : vector<8x64xf32>
    %c5 = arith.constant 5 : index
    %c0_36 = arith.constant 0 : index
    %c0_37 = arith.constant 0 : index
    %32 = vector.load %arg2[%c5, %c0_36, %c0_37] : memref<9x8x4xbf16, #tpu.memory_space<vmem>>, vector<1x8x4xbf16>
    %33 = vector.shape_cast %32 : vector<1x8x4xbf16> to vector<8x4xbf16>
    %c0_38 = arith.constant 0 : index
    %c2_39 = arith.constant 2 : index
    %c0_40 = arith.constant 0 : index
    %c72_41 = arith.constant 72 : index
    %34 = vector.load %arg1[%c0_38, %c2_39, %c0_40, %c72_41] : memref<2x3x4x144xbf16, #tpu.memory_space<vmem>>, vector<1x1x4x64xbf16>
    %35 = vector.shape_cast %34 : vector<1x1x4x64xbf16> to vector<4x64xbf16>
    %cst_42 = arith.constant dense<0.000000e+00> : vector<8x64xf32>
    %36 = tpu.matmul %33, %35, %cst_42 {dimension_numbers = #tpu.dot_dimension_numbers<[1], [0], [0], [1], [0, 0, 1, 1], [], []>} : vector<8x4xbf16>, vector<4x64xbf16>, vector<8x64xf32> -> vector<8x64xf32>
    %37 = arith.addf %31, %36 : vector<8x64xf32>
    %c6 = arith.constant 6 : index
    %c0_43 = arith.constant 0 : index
    %c0_44 = arith.constant 0 : index
    %38 = vector.load %arg2[%c6, %c0_43, %c0_44] : memref<9x8x4xbf16, #tpu.memory_space<vmem>>, vector<1x8x4xbf16>
    %39 = vector.shape_cast %38 : vector<1x8x4xbf16> to vector<8x4xbf16>
    %c0_45 = arith.constant 0 : index
    %c0_46 = arith.constant 0 : index
    %c0_47 = arith.constant 0 : index
    %c8 = arith.constant 8 : index
    %40 = vector.load %arg1[%c0_45, %c0_46, %c0_47, %c8] : memref<2x3x4x144xbf16, #tpu.memory_space<vmem>>, vector<1x1x4x64xbf16>
    %41 = vector.shape_cast %40 : vector<1x1x4x64xbf16> to vector<4x64xbf16>
    %cst_48 = arith.constant dense<0.000000e+00> : vector<8x64xf32>
    %42 = tpu.matmul %39, %41, %cst_48 {dimension_numbers = #tpu.dot_dimension_numbers<[1], [0], [0], [1], [0, 0, 1, 1], [], []>} : vector<8x4xbf16>, vector<4x64xbf16>, vector<8x64xf32> -> vector<8x64xf32>
    %43 = arith.addf %37, %42 : vector<8x64xf32>
    %c7 = arith.constant 7 : index
    %c0_49 = arith.constant 0 : index
    %c0_50 = arith.constant 0 : index
    %44 = vector.load %arg2[%c7, %c0_49, %c0_50] : memref<9x8x4xbf16, #tpu.memory_space<vmem>>, vector<1x8x4xbf16>
    %45 = vector.shape_cast %44 : vector<1x8x4xbf16> to vector<8x4xbf16>
    %c0_51 = arith.constant 0 : index
    %c1_52 = arith.constant 1 : index
    %c0_53 = arith.constant 0 : index
    %c8_54 = arith.constant 8 : index
    %46 = vector.load %arg1[%c0_51, %c1_52, %c0_53, %c8_54] : memref<2x3x4x144xbf16, #tpu.memory_space<vmem>>, vector<1x1x4x64xbf16>
    %47 = vector.shape_cast %46 : vector<1x1x4x64xbf16> to vector<4x64xbf16>
    %cst_55 = arith.constant dense<0.000000e+00> : vector<8x64xf32>
    %48 = tpu.matmul %45, %47, %cst_55 {dimension_numbers = #tpu.dot_dimension_numbers<[1], [0], [0], [1], [0, 0, 1, 1], [], []>} : vector<8x4xbf16>, vector<4x64xbf16>, vector<8x64xf32> -> vector<8x64xf32>
    %49 = arith.addf %43, %48 : vector<8x64xf32>
    %c8_56 = arith.constant 8 : index
    %c0_57 = arith.constant 0 : index
    %c0_58 = arith.constant 0 : index
    %50 = vector.load %arg2[%c8_56, %c0_57, %c0_58] : memref<9x8x4xbf16, #tpu.memory_space<vmem>>, vector<1x8x4xbf16>
    %51 = vector.shape_cast %50 : vector<1x8x4xbf16> to vector<8x4xbf16>
    %c0_59 = arith.constant 0 : index
    %c2_60 = arith.constant 2 : index
    %c0_61 = arith.constant 0 : index
    %c8_62 = arith.constant 8 : index
    %52 = vector.load %arg1[%c0_59, %c2_60, %c0_61, %c8_62] : memref<2x3x4x144xbf16, #tpu.memory_space<vmem>>, vector<1x1x4x64xbf16>
    %53 = vector.shape_cast %52 : vector<1x1x4x64xbf16> to vector<4x64xbf16>
    %cst_63 = arith.constant dense<0.000000e+00> : vector<8x64xf32>
    %54 = tpu.matmul %51, %53, %cst_63 {dimension_numbers = #tpu.dot_dimension_numbers<[1], [0], [0], [1], [0, 0, 1, 1], [], []>} : vector<8x4xbf16>, vector<4x64xbf16>, vector<8x64xf32> -> vector<8x64xf32>
    %55 = arith.addf %49, %54 : vector<8x64xf32>
    %56 = vector.broadcast %0 : vector<8x1xf32> to vector<8x64xf32>
    %57 = arith.addf %55, %56 : vector<8x64xf32>
    %cst_64 = arith.constant 0.000000e+00 : f32
    %58 = vector.broadcast %cst_64 : f32 to vector<8x64xf32>
    %59 = arith.maximumf %57, %58 : vector<8x64xf32>
    %cst_65 = arith.constant dense<0.000000e+00> : vector<8xf32>
    %60 = vector.multi_reduction <add>, %59, %cst_65 [1] : vector<8x64xf32> to vector<8xf32>
    %61 = vector.shape_cast %60 : vector<8xf32> to vector<8x1xf32>
    %cst_66 = arith.constant 1.562500e-02 : f32
    %62 = vector.broadcast %cst_66 : f32 to vector<8x1xf32>
    %63 = arith.mulf %61, %62 : vector<8x1xf32>
    %64 = vector.broadcast %63 : vector<8x1xf32> to vector<8x64xf32>
    %65 = arith.subf %59, %64 : vector<8x64xf32>
    %66 = vector.broadcast %63 : vector<8x1xf32> to vector<8x64xf32>
    %67 = arith.subf %59, %66 : vector<8x64xf32>
    %68 = arith.mulf %65, %67 : vector<8x64xf32>
    %cst_67 = arith.constant dense<0.000000e+00> : vector<8xf32>
    %69 = vector.multi_reduction <add>, %68, %cst_67 [1] : vector<8x64xf32> to vector<8xf32>
    %70 = vector.shape_cast %69 : vector<8xf32> to vector<8x1xf32>
    %71 = arith.truncf %59 : vector<8x64xf32> to vector<8x64xbf16>
    %c0_68 = arith.constant 0 : index
    %c0_69 = arith.constant 0 : index
    %c0_70 = arith.constant 0 : index
    %72 = vector.load %arg4[%c0_68, %c0_69, %c0_70] : memref<2x8x64xbf16, #tpu.memory_space<vmem>>, vector<1x8x64xbf16>
    %73 = vector.shape_cast %72 : vector<1x8x64xbf16> to vector<8x64xbf16>
    %74 = vector.shape_cast %71 : vector<8x64xbf16> to vector<1x8x64xbf16>
    tpu.vector_store %arg4[%c0_68, %c0_69, %c0_70], %74 {strides = array<i32>} : memref<2x8x64xbf16, #tpu.memory_space<vmem>>, vector<1x8x64xbf16>,
    %c0_71 = arith.constant 0 : index
    %c0_72 = arith.constant 0 : index
    %c0_73 = arith.constant 0 : index
    %75 = vector.load %arg5[%c0_71, %c0_72, %c0_73] : memref<2x8x2xf32, #tpu.memory_space<vmem>>, vector<1x8x1xf32>
    %76 = vector.shape_cast %75 : vector<1x8x1xf32> to vector<8x1xf32>
    %77 = vector.shape_cast %61 : vector<8x1xf32> to vector<1x8x1xf32>
    tpu.vector_store %arg5[%c0_71, %c0_72, %c0_73], %77 {strides = array<i32>} : memref<2x8x2xf32, #tpu.memory_space<vmem>>, vector<1x8x1xf32>,
    %c0_74 = arith.constant 0 : index
    %c0_75 = arith.constant 0 : index
    %c1_76 = arith.constant 1 : index
    %78 = vector.load %arg5[%c0_74, %c0_75, %c1_76] : memref<2x8x2xf32, #tpu.memory_space<vmem>>, vector<1x8x1xf32>
    %79 = vector.shape_cast %78 : vector<1x8x1xf32> to vector<8x1xf32>
    %80 = vector.shape_cast %70 : vector<8x1xf32> to vector<1x8x1xf32>
    tpu.vector_store %arg5[%c0_74, %c0_75, %c1_76], %80 {strides = array<i32>} : memref<2x8x2xf32, #tpu.memory_space<vmem>>, vector<1x8x1xf32>,
    %cst_77 = arith.constant 0.000000e+00 : f32
    %81 = vector.broadcast %cst_77 : f32 to vector<8x64xf32>
    %c0_78 = arith.constant 0 : index
    %c0_79 = arith.constant 0 : index
    %c0_80 = arith.constant 0 : index
    %82 = vector.load %arg2[%c0_78, %c0_79, %c0_80] : memref<9x8x4xbf16, #tpu.memory_space<vmem>>, vector<1x8x4xbf16>
    %83 = vector.shape_cast %82 : vector<1x8x4xbf16> to vector<8x4xbf16>
    %c1_81 = arith.constant 1 : index
    %c0_82 = arith.constant 0 : index
    %c0_83 = arith.constant 0 : index
    %c0_84 = arith.constant 0 : index
    %84 = vector.load %arg1[%c1_81, %c0_82, %c0_83, %c0_84] : memref<2x3x4x144xbf16, #tpu.memory_space<vmem>>, vector<1x1x4x64xbf16>
    %85 = vector.shape_cast %84 : vector<1x1x4x64xbf16> to vector<4x64xbf16>
    %cst_85 = arith.constant dense<0.000000e+00> : vector<8x64xf32>
    %86 = tpu.matmul %83, %85, %cst_85 {dimension_numbers = #tpu.dot_dimension_numbers<[1], [0], [0], [1], [0, 0, 1, 1], [], []>} : vector<8x4xbf16>, vector<4x64xbf16>, vector<8x64xf32> -> vector<8x64xf32>
    %87 = arith.addf %81, %86 : vector<8x64xf32>
    %c1_86 = arith.constant 1 : index
    %c0_87 = arith.constant 0 : index
    %c0_88 = arith.constant 0 : index
    %88 = vector.load %arg2[%c1_86, %c0_87, %c0_88] : memref<9x8x4xbf16, #tpu.memory_space<vmem>>, vector<1x8x4xbf16>
    %89 = vector.shape_cast %88 : vector<1x8x4xbf16> to vector<8x4xbf16>
    %c1_89 = arith.constant 1 : index
    %c1_90 = arith.constant 1 : index
    %c0_91 = arith.constant 0 : index
    %c0_92 = arith.constant 0 : index
    %90 = vector.load %arg1[%c1_89, %c1_90, %c0_91, %c0_92] : memref<2x3x4x144xbf16, #tpu.memory_space<vmem>>, vector<1x1x4x64xbf16>
    %91 = vector.shape_cast %90 : vector<1x1x4x64xbf16> to vector<4x64xbf16>
    %cst_93 = arith.constant dense<0.000000e+00> : vector<8x64xf32>
    %92 = tpu.matmul %89, %91, %cst_93 {dimension_numbers = #tpu.dot_dimension_numbers<[1], [0], [0], [1], [0, 0, 1, 1], [], []>} : vector<8x4xbf16>, vector<4x64xbf16>, vector<8x64xf32> -> vector<8x64xf32>
    %93 = arith.addf %87, %92 : vector<8x64xf32>
    %c2_94 = arith.constant 2 : index
    %c0_95 = arith.constant 0 : index
    %c0_96 = arith.constant 0 : index
    %94 = vector.load %arg2[%c2_94, %c0_95, %c0_96] : memref<9x8x4xbf16, #tpu.memory_space<vmem>>, vector<1x8x4xbf16>
    %95 = vector.shape_cast %94 : vector<1x8x4xbf16> to vector<8x4xbf16>
    %c1_97 = arith.constant 1 : index
    %c2_98 = arith.constant 2 : index
    %c0_99 = arith.constant 0 : index
    %c0_100 = arith.constant 0 : index
    %96 = vector.load %arg1[%c1_97, %c2_98, %c0_99, %c0_100] : memref<2x3x4x144xbf16, #tpu.memory_space<vmem>>, vector<1x1x4x64xbf16>
    %97 = vector.shape_cast %96 : vector<1x1x4x64xbf16> to vector<4x64xbf16>
    %cst_101 = arith.constant dense<0.000000e+00> : vector<8x64xf32>
    %98 = tpu.matmul %95, %97, %cst_101 {dimension_numbers = #tpu.dot_dimension_numbers<[1], [0], [0], [1], [0, 0, 1, 1], [], []>} : vector<8x4xbf16>, vector<4x64xbf16>, vector<8x64xf32> -> vector<8x64xf32>
    %99 = arith.addf %93, %98 : vector<8x64xf32>
    %c3_102 = arith.constant 3 : index
    %c0_103 = arith.constant 0 : index
    %c0_104 = arith.constant 0 : index
    %100 = vector.load %arg2[%c3_102, %c0_103, %c0_104] : memref<9x8x4xbf16, #tpu.memory_space<vmem>>, vector<1x8x4xbf16>
    %101 = vector.shape_cast %100 : vector<1x8x4xbf16> to vector<8x4xbf16>
    %c1_105 = arith.constant 1 : index
    %c0_106 = arith.constant 0 : index
    %c0_107 = arith.constant 0 : index
    %c72_108 = arith.constant 72 : index
    %102 = vector.load %arg1[%c1_105, %c0_106, %c0_107, %c72_108] : memref<2x3x4x144xbf16, #tpu.memory_space<vmem>>, vector<1x1x4x64xbf16>
    %103 = vector.shape_cast %102 : vector<1x1x4x64xbf16> to vector<4x64xbf16>
    %cst_109 = arith.constant dense<0.000000e+00> : vector<8x64xf32>
    %104 = tpu.matmul %101, %103, %cst_109 {dimension_numbers = #tpu.dot_dimension_numbers<[1], [0], [0], [1], [0, 0, 1, 1], [], []>} : vector<8x4xbf16>, vector<4x64xbf16>, vector<8x64xf32> -> vector<8x64xf32>
    %105 = arith.addf %99, %104 : vector<8x64xf32>
    %c4_110 = arith.constant 4 : index
    %c0_111 = arith.constant 0 : index
    %c0_112 = arith.constant 0 : index
    %106 = vector.load %arg2[%c4_110, %c0_111, %c0_112] : memref<9x8x4xbf16, #tpu.memory_space<vmem>>, vector<1x8x4xbf16>
    %107 = vector.shape_cast %106 : vector<1x8x4xbf16> to vector<8x4xbf16>
    %c1_113 = arith.constant 1 : index
    %c1_114 = arith.constant 1 : index
    %c0_115 = arith.constant 0 : index
    %c72_116 = arith.constant 72 : index
    %108 = vector.load %arg1[%c1_113, %c1_114, %c0_115, %c72_116] : memref<2x3x4x144xbf16, #tpu.memory_space<vmem>>, vector<1x1x4x64xbf16>
    %109 = vector.shape_cast %108 : vector<1x1x4x64xbf16> to vector<4x64xbf16>
    %cst_117 = arith.constant dense<0.000000e+00> : vector<8x64xf32>
    %110 = tpu.matmul %107, %109, %cst_117 {dimension_numbers = #tpu.dot_dimension_numbers<[1], [0], [0], [1], [0, 0, 1, 1], [], []>} : vector<8x4xbf16>, vector<4x64xbf16>, vector<8x64xf32> -> vector<8x64xf32>
    %111 = arith.addf %105, %110 : vector<8x64xf32>
    %c5_118 = arith.constant 5 : index
    %c0_119 = arith.constant 0 : index
    %c0_120 = arith.constant 0 : index
    %112 = vector.load %arg2[%c5_118, %c0_119, %c0_120] : memref<9x8x4xbf16, #tpu.memory_space<vmem>>, vector<1x8x4xbf16>
    %113 = vector.shape_cast %112 : vector<1x8x4xbf16> to vector<8x4xbf16>
    %c1_121 = arith.constant 1 : index
    %c2_122 = arith.constant 2 : index
    %c0_123 = arith.constant 0 : index
    %c72_124 = arith.constant 72 : index
    %114 = vector.load %arg1[%c1_121, %c2_122, %c0_123, %c72_124] : memref<2x3x4x144xbf16, #tpu.memory_space<vmem>>, vector<1x1x4x64xbf16>
    %115 = vector.shape_cast %114 : vector<1x1x4x64xbf16> to vector<4x64xbf16>
    %cst_125 = arith.constant dense<0.000000e+00> : vector<8x64xf32>
    %116 = tpu.matmul %113, %115, %cst_125 {dimension_numbers = #tpu.dot_dimension_numbers<[1], [0], [0], [1], [0, 0, 1, 1], [], []>} : vector<8x4xbf16>, vector<4x64xbf16>, vector<8x64xf32> -> vector<8x64xf32>
    %117 = arith.addf %111, %116 : vector<8x64xf32>
    %c6_126 = arith.constant 6 : index
    %c0_127 = arith.constant 0 : index
    %c0_128 = arith.constant 0 : index
    %118 = vector.load %arg2[%c6_126, %c0_127, %c0_128] : memref<9x8x4xbf16, #tpu.memory_space<vmem>>, vector<1x8x4xbf16>
    %119 = vector.shape_cast %118 : vector<1x8x4xbf16> to vector<8x4xbf16>
    %c1_129 = arith.constant 1 : index
    %c0_130 = arith.constant 0 : index
    %c0_131 = arith.constant 0 : index
    %c8_132 = arith.constant 8 : index
    %120 = vector.load %arg1[%c1_129, %c0_130, %c0_131, %c8_132] : memref<2x3x4x144xbf16, #tpu.memory_space<vmem>>, vector<1x1x4x64xbf16>
    %121 = vector.shape_cast %120 : vector<1x1x4x64xbf16> to vector<4x64xbf16>
    %cst_133 = arith.constant dense<0.000000e+00> : vector<8x64xf32>
    %122 = tpu.matmul %119, %121, %cst_133 {dimension_numbers = #tpu.dot_dimension_numbers<[1], [0], [0], [1], [0, 0, 1, 1], [], []>} : vector<8x4xbf16>, vector<4x64xbf16>, vector<8x64xf32> -> vector<8x64xf32>
    %123 = arith.addf %117, %122 : vector<8x64xf32>
    %c7_134 = arith.constant 7 : index
    %c0_135 = arith.constant 0 : index
    %c0_136 = arith.constant 0 : index
    %124 = vector.load %arg2[%c7_134, %c0_135, %c0_136] : memref<9x8x4xbf16, #tpu.memory_space<vmem>>, vector<1x8x4xbf16>
    %125 = vector.shape_cast %124 : vector<1x8x4xbf16> to vector<8x4xbf16>
    %c1_137 = arith.constant 1 : index
    %c1_138 = arith.constant 1 : index
    %c0_139 = arith.constant 0 : index
    %c8_140 = arith.constant 8 : index
    %126 = vector.load %arg1[%c1_137, %c1_138, %c0_139, %c8_140] : memref<2x3x4x144xbf16, #tpu.memory_space<vmem>>, vector<1x1x4x64xbf16>
    %127 = vector.shape_cast %126 : vector<1x1x4x64xbf16> to vector<4x64xbf16>
    %cst_141 = arith.constant dense<0.000000e+00> : vector<8x64xf32>
    %128 = tpu.matmul %125, %127, %cst_141 {dimension_numbers = #tpu.dot_dimension_numbers<[1], [0], [0], [1], [0, 0, 1, 1], [], []>} : vector<8x4xbf16>, vector<4x64xbf16>, vector<8x64xf32> -> vector<8x64xf32>
    %129 = arith.addf %123, %128 : vector<8x64xf32>
    %c8_142 = arith.constant 8 : index
    %c0_143 = arith.constant 0 : index
    %c0_144 = arith.constant 0 : index
    %130 = vector.load %arg2[%c8_142, %c0_143, %c0_144] : memref<9x8x4xbf16, #tpu.memory_space<vmem>>, vector<1x8x4xbf16>
    %131 = vector.shape_cast %130 : vector<1x8x4xbf16> to vector<8x4xbf16>
    %c1_145 = arith.constant 1 : index
    %c2_146 = arith.constant 2 : index
    %c0_147 = arith.constant 0 : index
    %c8_148 = arith.constant 8 : index
    %132 = vector.load %arg1[%c1_145, %c2_146, %c0_147, %c8_148] : memref<2x3x4x144xbf16, #tpu.memory_space<vmem>>, vector<1x1x4x64xbf16>
    %133 = vector.shape_cast %132 : vector<1x1x4x64xbf16> to vector<4x64xbf16>
    %cst_149 = arith.constant dense<0.000000e+00> : vector<8x64xf32>
    %134 = tpu.matmul %131, %133, %cst_149 {dimension_numbers = #tpu.dot_dimension_numbers<[1], [0], [0], [1], [0, 0, 1, 1], [], []>} : vector<8x4xbf16>, vector<4x64xbf16>, vector<8x64xf32> -> vector<8x64xf32>
    %135 = arith.addf %129, %134 : vector<8x64xf32>
    %136 = vector.broadcast %0 : vector<8x1xf32> to vector<8x64xf32>
    %137 = arith.addf %135, %136 : vector<8x64xf32>
    %cst_150 = arith.constant 0.000000e+00 : f32
    %138 = vector.broadcast %cst_150 : f32 to vector<8x64xf32>
    %139 = arith.maximumf %137, %138 : vector<8x64xf32>
    %cst_151 = arith.constant dense<0.000000e+00> : vector<8xf32>
    %140 = vector.multi_reduction <add>, %139, %cst_151 [1] : vector<8x64xf32> to vector<8xf32>
    %141 = vector.shape_cast %140 : vector<8xf32> to vector<8x1xf32>
    %cst_152 = arith.constant 1.562500e-02 : f32
    %142 = vector.broadcast %cst_152 : f32 to vector<8x1xf32>
    %143 = arith.mulf %141, %142 : vector<8x1xf32>
    %144 = vector.broadcast %143 : vector<8x1xf32> to vector<8x64xf32>
    %145 = arith.subf %139, %144 : vector<8x64xf32>
    %146 = vector.broadcast %143 : vector<8x1xf32> to vector<8x64xf32>
    %147 = arith.subf %139, %146 : vector<8x64xf32>
    %148 = arith.mulf %145, %147 : vector<8x64xf32>
    %cst_153 = arith.constant dense<0.000000e+00> : vector<8xf32>
    %149 = vector.multi_reduction <add>, %148, %cst_153 [1] : vector<8x64xf32> to vector<8xf32>
    %150 = vector.shape_cast %149 : vector<8xf32> to vector<8x1xf32>
    %151 = arith.truncf %139 : vector<8x64xf32> to vector<8x64xbf16>
    %c1_154 = arith.constant 1 : index
    %c0_155 = arith.constant 0 : index
    %c0_156 = arith.constant 0 : index
    %152 = vector.load %arg4[%c1_154, %c0_155, %c0_156] : memref<2x8x64xbf16, #tpu.memory_space<vmem>>, vector<1x8x64xbf16>
    %153 = vector.shape_cast %152 : vector<1x8x64xbf16> to vector<8x64xbf16>
    %154 = vector.shape_cast %151 : vector<8x64xbf16> to vector<1x8x64xbf16>
    tpu.vector_store %arg4[%c1_154, %c0_155, %c0_156], %154 {strides = array<i32>} : memref<2x8x64xbf16, #tpu.memory_space<vmem>>, vector<1x8x64xbf16>,
    %c1_157 = arith.constant 1 : index
    %c0_158 = arith.constant 0 : index
    %c0_159 = arith.constant 0 : index
    %155 = vector.load %arg5[%c1_157, %c0_158, %c0_159] : memref<2x8x2xf32, #tpu.memory_space<vmem>>, vector<1x8x1xf32>
    %156 = vector.shape_cast %155 : vector<1x8x1xf32> to vector<8x1xf32>
    %157 = vector.shape_cast %141 : vector<8x1xf32> to vector<1x8x1xf32>
    tpu.vector_store %arg5[%c1_157, %c0_158, %c0_159], %157 {strides = array<i32>} : memref<2x8x2xf32, #tpu.memory_space<vmem>>, vector<1x8x1xf32>,
    %c1_160 = arith.constant 1 : index
    %c0_161 = arith.constant 0 : index
    %c1_162 = arith.constant 1 : index
    %158 = vector.load %arg5[%c1_160, %c0_161, %c1_162] : memref<2x8x2xf32, #tpu.memory_space<vmem>>, vector<1x8x1xf32>
    %159 = vector.shape_cast %158 : vector<1x8x1xf32> to vector<8x1xf32>
    %160 = vector.shape_cast %150 : vector<8x1xf32> to vector<1x8x1xf32>
    tpu.vector_store %arg5[%c1_160, %c0_161, %c1_162], %160 {strides = array<i32>} : memref<2x8x2xf32, #tpu.memory_space<vmem>>, vector<1x8x1xf32>,
    return
  }
  func.func @transform_0(%arg0: i32) -> (i32, i32, i32, i32) {
    %c0_i32 = arith.constant 0 : i32
    %c0_i32_0 = arith.constant 0 : i32
    %c0_i32_1 = arith.constant 0 : i32
    %c0_i32_2 = arith.constant 0 : i32
    return %arg0, %c0_i32, %c0_i32_0, %c0_i32_1 : i32, i32, i32, i32
  }
  func.func @transform_1(%arg0: i32) -> (i32, i32, i32) {
    %c0_i32 = arith.constant 0 : i32
    %c0_i32_0 = arith.constant 0 : i32
    %c0_i32_1 = arith.constant 0 : i32
    %c0_i32_2 = arith.constant 0 : i32
    return %c0_i32, %c0_i32_0, %c0_i32_1 : i32, i32, i32
  }
  func.func @transform_2(%arg0: i32) -> (i32, i32) {
    %c0_i32 = arith.constant 0 : i32
    %c0_i32_0 = arith.constant 0 : i32
    %c0_i32_1 = arith.constant 0 : i32
    return %c0_i32, %c0_i32_0 : i32, i32
  }
  func.func @transform_3(%arg0: i32) -> (i32, i32, i32) {
    %c0_i32 = arith.constant 0 : i32
    %c0_i32_0 = arith.constant 0 : i32
    %c0_i32_1 = arith.constant 0 : i32
    return %arg0, %c0_i32, %c0_i32_0 : i32, i32, i32
  }
  func.func @transform_4(%arg0: i32) -> (i32, i32, i32) {
    %c0_i32 = arith.constant 0 : i32
    %c0_i32_0 = arith.constant 0 : i32
    %c0_i32_1 = arith.constant 0 : i32
    return %arg0, %c0_i32, %c0_i32_0 : i32, i32, i32
  }
}

</mosaic_0001>

<bundles_post_ra>
// kernel: tpu_custom_call.1
= control target key start
LH: loop header
LB: loop body
LE: loop exit
PB: predicated region body
PF: predicated region fallthrough
CT: control target
= control target key end

     0   :  { %s901_s0 = inlined_call_operand.vmem [shape: bf16[2,3,4,144], index: 0, kind: input, shape index: {}]   ;;  %s902_s1 = inlined_call_operand.vmem [shape: bf16[9,8,4], index: 1, kind: input, shape index: {}]   ;;  %s903_s2 = inlined_call_operand.vmem [shape: f32[8,1], index: 2, kind: input, shape index: {}]   ;;  %s904_s3 = inlined_call_operand.hbm [shape: bf16[2,8,64], index: 3, kind: output, shape index: {0}]   ;;  %s905_s4 = inlined_call_operand.vmem [shape: f32[2,8,2], index: 4, kind: output, shape index: {1}]  }
   0x1   :  { %v91_v0 = vld [vmem:[%s901_s0] sm:$0xf] }
   0x2   :  { %93 = vst [vmem:[#allocation1] ss:$4 sm:$0xff] %v91_v0 }
   0x3   :  { %10 = vsyncpa [#allocation3], 0  ;;  %v602_v1 = vld [vmem:[%s901_s0 + $0x4] sm:$0xf]  ;;  %s676_s19 = smov 56   ;;  %s677_s26 = smov 120  }
   0x4   :  { %v605_v4 = vld [vmem:[%s901_s0 + $0x8] sm:$0xf]  ;;  %v194_v7 = vld [vmem:[%s901_s0] sm:$0x3]  ;;  %v610_v10 = vld [vmem:[%s901_s0 + $0x4] sm:$0x3] }
   0x5   :  { %v613_v12 = vld [vmem:[%s901_s0 + $0x8] sm:$0x3]  ;;  %v624_v14 = vld [vmem:[%s901_s0 + $0xc] sm:$0xf]  ;;  %v627_v16 = vld [vmem:[%s901_s0 + $0x10] sm:$0xf] }
   0x6   :  { %v630_v19 = vld [vmem:[%s901_s0 + $0x14] sm:$0xf]  ;;  %v633_v22 = vld [vmem:[%s901_s0 + $0xc] sm:$0x3]  ;;  %v636_v25 = vld [vmem:[%s901_s0 + $0x10] sm:$0x3] }
   0x7   :  { %v639_v27 = vld [vmem:[%s901_s0 + $0x14] sm:$0x3]  ;;  %v593_v29 = vld [vmem:[%s901_s0 + $0x4] sm:$0x3]  ;;  %vm29_vm0 = vcmask 1041408   ;;  %vm25_vm1 = vcmask 31744  }
   0x8   :  { %v31_v30 = vsel %vm29_vm0, %v593_v29, 0  ;;  %v592_v31 = vld [vmem:[%s902_s1 + $0x4] sm:$0xf]  ;;  %v597_v33 = vld [vmem:[%s901_s0 + $0x8] sm:$0x3]  ;;  %vm102_vm2 = vcmask 457728  }
   0x9   :  { %v94_v2 = vld.sshfl [vmem:[#allocation1] sm:$0xff pattern:$0x73625140]  ;;  %v96_v3 = vld.sshfl [vmem:[#allocation1 + $0x8] sm:$0xff pattern:$0x73625140]  ;;  %40 = vmatpush.bf16.msra.mxu0 %v31_v30 }
   0xa   :  { %98 = vrot.lane.b32.xlu0 %v94_v2, %s676_s19  ;;  %128 = vst [vmem:[#allocation1] ss:$4 sm:$0xff] %v602_v1  ;;  %v20_v34 = vld [vmem:[%s901_s0] sm:$0x3]  ;;  %v73_v35 = vsel %vm29_vm0, %v597_v33, 0  ;;  %v678_v60 = vmov 0  }
   0xb   :  { %v50_v36 = vsel %vm29_vm0, %v20_v34, 0  ;;  %82 = vmatpush.bf16.msra.mxu2 %v73_v35  ;;  %v596_v37 = vld [vmem:[%s902_s1 + $0x8] sm:$0xf]  ;;  %v19_v38 = vld [vmem:[%s902_s1] sm:$0xf]  ;;  %649 = vset.pattern.permute.xlu0 %v678_v60  ;;  %vm286_vm3 = vcmask 523264  }
   0xc   :  { %594 = vmatmul.msk.bf16.vlgmr.msra.gmra.mxu0 %vm25_vm1, %v592_v31  ;;  %59 = vmatpush.bf16.msra.mxu1 %v50_v36  ;;  %v604_v44 = vld [vmem:[%s902_s1 + $0x14] sm:$0xf]  ;;  %v617_v45 = vld [vmem:[%s901_s0 + $0x10] sm:$0x3]  ;;  %v599_v51 = vld [vmem:[%s902_s1 + $0xc] sm:$0xf] }
   0xd   :  { %v313_v46 = vsel %vm29_vm0, %v617_v45, 0  ;;  %v18_v57 = vld [vmem:[%s903_s2] sm:$0xff]  ;;  %v601_v58 = vld [vmem:[%s902_s1 + $0x10] sm:$0xf]  ;;  %v615_v61 = vld [vmem:[%s901_s0 + $0xc] sm:$0x3] }
   0xe   :  { %598 = vmatmul.msk.bf16.vlgmr.msra.gmra.mxu2 %vm25_vm1, %v596_v37  ;;  %v616_v59 = vld [vmem:[%s902_s1 + $0x4] sm:$0xf]  ;;  %v332_v63 = vsel %vm29_vm0, %v615_v61, 0  ;;  %v607_v1 = vld [vmem:[%s902_s1 + $0x18] sm:$0xf]  ;;  %vm297_vm4 = vcmask 519168  }
   0xf   :  { %595 = vmatmul.msk.bf16.vlgmr.msra.gmra.mxu1 %vm25_vm1, %v19_v38  ;;  %v621_v2 = vld [vmem:[%s901_s0 + $0x14] sm:$0x3]  ;;  %v632_v29 = vld [vmem:[%s902_s1 + $0x18] sm:$0xf]  ;;  %v638_v30 = vld [vmem:[%s902_s1 + $0x20] sm:$0xf] }
  0x10   :  { %v635_v33 = vld [vmem:[%s902_s1 + $0x1c] sm:$0xf]  ;;  %vm299_vm5 = vcmask 7168   ;;  %s679_s12 = smov [#allocation2]   ;;  %s576_s15 = sshll.u32 %s904_s3, 4  ;;  %vm301_vm6 = vcmask 15368   ;;  %s577_s15 = int_to_ptr.hbm [resolvable:$true] %s576_s15 }
  0x11   :  { %v129_v5 = vld.sshfl [vmem:[#allocation1] sm:$0xff pattern:$0x73625140]  ;;  %v131_v6 = vld.sshfl [vmem:[#allocation1 + $0x8] sm:$0xff pattern:$0x73625140] }
  0x12   :  { %100 = vrot.lane.b32.xlu0 %v96_v3, %s676_s19  ;;  %133 = vrot.lane.b32.xlu1 %v129_v5, %s676_s19  ;;  %162 = vst [vmem:[#allocation1] ss:$4 sm:$0xff] %v605_v4  ;;  %v354_v4 = vsel %vm29_vm0, %v621_v2, 0  ;;  %s574_s13 = sshll.u32 %s679_s12, 4  ;;  %s680_s16 = smov 64   ;;  %s575_s13 = int_to_ptr.vmem [resolvable:$true] %s574_s13 }
  0x13   :  { %s681_s17 = smov 4  }
  0x19   :  { %v163_v8 = vld.sshfl [vmem:[#allocation1] sm:$0xff pattern:$0x73625140]  ;;  %v165_v9 = vld.sshfl [vmem:[#allocation1 + $0x8] sm:$0xff pattern:$0x73625140] }
  0x1a   :  { %135 = vrot.lane.b32.xlu1 %v131_v6, %s676_s19  ;;  %196 = vst [vmem:[#allocation1] ss:$4 sm:$0xff] %v194_v7  ;;  %167 = vrot.lane.b32.xlu2 %v163_v8, %s676_s19  ;;  %v609_v6 = vld [vmem:[%s902_s1 + $0x1c] sm:$0xf]  ;;  %v612_v7 = vld [vmem:[%s902_s1 + $0x20] sm:$0xf] }
  0x1b   :  { %v303_v8 = vld [vmem:[%s902_s1] sm:$0xf] }
  0x21   :  { %v197_v11 = vld.sshfl [vmem:[#allocation1] sm:$0xff pattern:$0x73625140] }
  0x22   :  { %199 = vrot.lane.b32.xlu0 %v197_v11, %s677_s26  ;;  %225 = vst [vmem:[#allocation1] ss:$4 sm:$0xff] %v610_v10  ;;  %169 = vrot.lane.b32.xlu2 %v165_v9, %s676_s19 }
  0x29   :  { %v226_v13 = vld.sshfl [vmem:[#allocation1] sm:$0xff pattern:$0x73625140] }
  0x2a   :  { %228 = vrot.lane.b32.xlu1 %v226_v13, %s677_s26  ;;  %254 = vst [vmem:[#allocation1] ss:$4 sm:$0xff] %v613_v12 }
  0x31   :  { %v255_v15 = vld.sshfl [vmem:[#allocation1] sm:$0xff pattern:$0x73625140] }
  0x32   :  { %373 = vst [vmem:[#allocation1] ss:$4 sm:$0xff] %v624_v14  ;;  %257 = vrot.lane.b32.xlu2 %v255_v15, %s677_s26  ;;  %v620_v14 = vld [vmem:[%s902_s1 + $0x8] sm:$0xf]  ;;  %v623_v15 = vld [vmem:[%s902_s1 + $0xc] sm:$0xf] }
  0x39   :  { %v374_v17 = vld.sshfl [vmem:[#allocation1] sm:$0xff pattern:$0x73625140]  ;;  %v376_v18 = vld.sshfl [vmem:[#allocation1 + $0x8] sm:$0xff pattern:$0x73625140] }
  0x3a   :  { %378 = vrot.lane.b32.xlu0 %v374_v17, %s676_s19  ;;  %380 = vrot.lane.b32.xlu1 %v376_v18, %s676_s19  ;;  %406 = vst [vmem:[#allocation1] ss:$4 sm:$0xff] %v627_v16 }
  0x41   :  { %v409_v20 = vld.sshfl [vmem:[#allocation1 + $0x8] sm:$0xff pattern:$0x73625140]  ;;  %v407_v21 = vld.sshfl [vmem:[#allocation1] sm:$0xff pattern:$0x73625140] }
  0x42   :  { %413 = vrot.lane.b32.xlu0 %v409_v20, %s676_s19  ;;  %439 = vst [vmem:[#allocation1] ss:$4 sm:$0xff] %v630_v19  ;;  %411 = vrot.lane.b32.xlu2 %v407_v21, %s676_s19  ;;  %v626_v20 = vld [vmem:[%s902_s1 + $0x10] sm:$0xf] }
  0x49   :  { %v440_v23 = vld.sshfl [vmem:[#allocation1] sm:$0xff pattern:$0x73625140]  ;;  %v442_v24 = vld.sshfl [vmem:[#allocation1 + $0x8] sm:$0xff pattern:$0x73625140] }
  0x4a   :  { %444 = vrot.lane.b32.xlu1 %v440_v23, %s676_s19  ;;  %472 = vst [vmem:[#allocation1] ss:$4 sm:$0xff] %v633_v22  ;;  %446 = vrot.lane.b32.xlu2 %v442_v24, %s676_s19 }
  0x51   :  { %v473_v26 = vld.sshfl [vmem:[#allocation1] sm:$0xff pattern:$0x73625140] }
  0x52   :  { %475 = vrot.lane.b32.xlu0 %v473_v26, %s677_s26  ;;  %500 = vst [vmem:[#allocation1] ss:$4 sm:$0xff] %v636_v25  ;;  %v629_v26 = vld [vmem:[%s902_s1 + $0x14] sm:$0xf] }
  0x59   :  { %v501_v28 = vld.sshfl [vmem:[#allocation1] sm:$0xff pattern:$0x73625140] }
  0x5a   :  { %503 = vrot.lane.b32.xlu1 %v501_v28, %s677_s26  ;;  %528 = vst [vmem:[#allocation1] ss:$4 sm:$0xff] %v639_v27  ;;  %281 = vperm.xlu0 %649, %v18_v57  }
  0x61   :  { %v529_v32 = vld.sshfl [vmem:[#allocation1] sm:$0xff pattern:$0x73625140] }
  0x62   :  { %531 = vrot.lane.b32.xlu2 %v529_v32, %s677_s26 }
  0x74   :  { %v168_v39 = vpop.permute.xlu2 %167 }
  0x7c   :  { %v99_v40 = vpop.permute.xlu0 %98  ;;  %v170_v41 = vpop.permute.xlu2 %169 }
  0x7d   :  { %v171_v42 = vsel %vm102_vm2, %v168_v39, %v170_v41 }
  0x7e   :  { %v176_v43 = vsel %vm29_vm0, %v171_v42, 0 }
  0x7f   :  { %185 = vmatpush.bf16.msrb.mxu1 %v176_v43 }
  0x82   :  { %606 = vmatmul.msk.bf16.vlgmr.msrb.gmra.mxu1 %vm25_vm1, %v604_v44 }
  0x83   :  { %322 = vmatpush.bf16.msra.mxu1 %v313_v46 }
  0x84   :  { %v101_v47 = vpop.permute.xlu0 %100  ;;  %v134_v48 = vpop.permute.xlu1 %133 }
  0x85   :  { %v103_v49 = vsel %vm102_vm2, %v99_v40, %v101_v47 }
  0x86   :  { %v108_v50 = vsel %vm29_vm0, %v103_v49, 0 }
  0x87   :  { %117 = vmatpush.bf16.msra.mxu3 %v108_v50 }
  0x89   :  { %v42_v34 = vpop.f32.mrf.mxu0 }
  0x8a   :  { %600 = vmatmul.msk.bf16.vlgmr.msra.gmra.mxu3 %vm25_vm1, %v599_v51 }
  0x8c   :  { %v136_v52 = vpop.permute.xlu1 %135  ;;  %v258_v53 = vpop.permute.xlu2 %257 }
  0x8d   :  { %v137_v54 = vsel %vm102_vm2, %v134_v48, %v136_v52  ;;  %v263_v55 = vsel %vm29_vm0, %v258_v53, 0  ;;  %v61_v36 = vpop.f32.mrf.mxu1 }
  0x8e   :  { %v142_v56 = vsel %vm29_vm0, %v137_v54, 0  ;;  %v62_v45 = vadd.f32 %v61_v36, %v42_v34 }
  0x8f   :  { %151 = vmatpush.bf16.msrb.mxu0 %v142_v56 }
  0x91   :  { %v44_v35 = vpop.f32.mrf.mxu0  ;;  %v84_v37 = vpop.f32.mrf.mxu2 }
  0x92   :  { %603 = vmatmul.msk.bf16.vlgmr.msrb.gmra.mxu0 %vm25_vm1, %v601_v58  ;;  %618 = vmatmul.msk.bf16.vlgmr.msra.gmra.mxu1 %vm25_vm1, %v616_v59  ;;  %v88_v46 = vadd.f32 %v84_v37, %v62_v45 }
  0x93   :  { %272 = vmatpush.bf16.msra.mxu0 %v263_v55 }
  0x94   :  { %v200_v62 = vpop.permute.xlu0 %199 }
  0x95   :  { %v205_v0 = vsel %vm29_vm0, %v200_v62, 0  ;;  %v63_v38 = vpop.f32.mrf.mxu1 }
  0x96   :  { %214 = vmatpush.bf16.msrb.mxu2 %v205_v0 }
  0x99   :  { %608 = vmatmul.msk.bf16.vlgmr.msrb.gmra.mxu2 %vm25_vm1, %v607_v1  ;;  %v86_v39 = vpop.f32.mrf.mxu2 }
  0x9a   :  { %341 = vmatpush.bf16.msra.mxu2 %v332_v63 }
  0x9c   :  { %v229_v3 = vpop.permute.xlu1 %228  ;;  %v412_v9 = vpop.permute.xlu2 %411 }
  0x9d   :  { %v234_v5 = vsel %vm29_vm0, %v229_v3, 0 }
  0x9e   :  { %243 = vmatpush.bf16.msrb.mxu3 %v234_v5 }
  0xa1   :  { %611 = vmatmul.msk.bf16.vlgmr.msrb.gmra.mxu3 %vm25_vm1, %v609_v6 }
  0xa2   :  { %363 = vmatpush.bf16.msra.mxu3 %v354_v4  ;;  %614 = vmatmul.msk.bf16.vlgmr.msra.gmra.mxu0 %vm25_vm1, %v612_v7 }
  0xa4   :  { %v447_v17 = vpop.permute.xlu2 %446 }
  0xa9   :  { %619 = vmatmul.msk.bf16.vlgmr.msra.gmra.mxu2 %vm25_vm1, %v303_v8 }
  0xac   :  { %v379_v10 = vpop.permute.xlu0 %378  ;;  %v381_v11 = vpop.permute.xlu1 %380 }
  0xad   :  { %v382_v12 = vsel %vm102_vm2, %v379_v10, %v381_v11 }
  0xae   :  { %v387_v13 = vsel %vm29_vm0, %v382_v12, 0 }
  0xaf   :  { %396 = vmatpush.bf16.msrb.mxu0 %v387_v13 }
  0xb1   :  { %622 = vmatmul.msk.bf16.vlgmr.msra.gmra.mxu3 %vm25_vm1, %v620_v14 }
  0xb2   :  { %625 = vmatmul.msk.bf16.vlgmr.msrb.gmra.mxu0 %vm25_vm1, %v623_v15 }
  0xb4   :  { %v414_v16 = vpop.permute.xlu0 %413 }
  0xb5   :  { %v415_v18 = vsel %vm102_vm2, %v412_v9, %v414_v16 }
  0xb6   :  { %v420_v19 = vsel %vm29_vm0, %v415_v18, 0 }
  0xb7   :  { %429 = vmatpush.bf16.msrb.mxu1 %v420_v19 }
  0xba   :  { %628 = vmatmul.msk.bf16.vlgmr.msrb.gmra.mxu1 %vm25_vm1, %v626_v20 }
  0xbc   :  { %v445_v21 = vpop.permute.xlu1 %444  ;;  %v532_v22 = vpop.permute.xlu2 %531 }
  0xbd   :  { %v448_v23 = vsel %vm102_vm2, %v445_v21, %v447_v17  ;;  %v537_v24 = vsel %vm29_vm0, %v532_v22, 0 }
  0xbe   :  { %v453_v25 = vsel %vm29_vm0, %v448_v23, 0  ;;  %546 = vmatpush.bf16.msra.mxu1 %v537_v24 }
  0xbf   :  { %462 = vmatpush.bf16.msrb.mxu2 %v453_v25 }
  0xc2   :  { %631 = vmatmul.msk.bf16.vlgmr.msrb.gmra.mxu2 %vm25_vm1, %v629_v26 }
  0xc4   :  { %v476_v27 = vpop.permute.xlu0 %475 }
  0xc5   :  { %v481_v28 = vsel %vm29_vm0, %v476_v27, 0 }
  0xc6   :  { %490 = vmatpush.bf16.msrb.mxu3 %v481_v28 }
  0xc9   :  { %634 = vmatmul.msk.bf16.vlgmr.msrb.gmra.mxu3 %vm25_vm1, %v632_v29 }
  0xca   :  { %640 = vmatmul.msk.bf16.vlgmr.msra.gmra.mxu1 %vm25_vm1, %v638_v30 }
  0xcc   :  { %v504_v31 = vpop.permute.xlu1 %503  ;;  %v282_v59 = vpop.permute.xlu0 %281 }
  0xcd   :  { %v509_v32 = vsel %vm29_vm0, %v504_v31, 0 }
  0xce   :  { %518 = vmatpush.bf16.msra.mxu0 %v509_v32 }
  0xd1   :  { %637 = vmatmul.msk.bf16.vlgmr.msra.gmra.mxu0 %vm25_vm1, %v635_v33 }
  0xff   :  { %v187_v40 = vpop.f32.mrf.mxu1 }
 0x107   :  { %v189_v41 = vpop.f32.mrf.mxu1 }
 0x10d   :  { %v119_v42 = vpop.f32.mrf.mxu3 }
 0x10e   :  { %v123_v50 = vadd.f32 %v119_v42, %v88_v46 }
 0x10f   :  { %v153_v43 = vpop.f32.mrf.mxu0  ;;  %v324_v44 = vpop.f32.mrf.mxu1 }
 0x110   :  { %v157_v52 = vadd.f32 %v153_v43, %v123_v50 }
 0x112   :  { %v191_v54 = vadd.f32 %v187_v40, %v157_v52 }
 0x115   :  { %v121_v47 = vpop.f32.mrf.mxu3 }
 0x117   :  { %v155_v48 = vpop.f32.mrf.mxu0  ;;  %v326_v49 = vpop.f32.mrf.mxu1 }
 0x11c   :  { %v216_v51 = vpop.f32.mrf.mxu2 }
 0x11d   :  { %v220_v55 = vadd.f32 %v216_v51, %v191_v54 }
 0x11f   :  { %v274_v53 = vpop.f32.mrf.mxu0 }
 0x124   :  { %v245_v56 = vpop.f32.mrf.mxu3  ;;  %v218_v57 = vpop.f32.mrf.mxu2 }
 0x125   :  { %v249_v58 = vadd.f32 %v245_v56, %v220_v55 }
 0x127   :  { %v278_v60 = vadd.f32 %v274_v53, %v249_v58  ;;  %v276_v61 = vpop.f32.mrf.mxu0 }
 0x129   :  { %v284_v62 = vadd.f32 %v282_v59, %v278_v60 }
 0x12b   :  { %v285_v63 = vmax.f32 %v284_v62, 0.0 }
 0x12c   :  { %v247_v0 = vpop.f32.mrf.mxu3  ;;  %v343_v1 = vpop.f32.mrf.mxu2 }
 0x12d   :  { %v296_v2 = vpack.c.bf16 %v285_v63, %v285_v63  ;;  %v287_v3 = vsel %vm286_vm3, %v285_v63, 0.0  ;;  %v344_v10 = vadd.f32 %v343_v1, %v324_v44 }
 0x12e   :  { %288 = vadd.xlane.f32.xlu1 %v287_v3 }
 0x12f   :  { %298 = vst.msk [vmem:[#allocation2] sm:$0xf] %vm297_vm4, %v296_v2  ;;  %v398_v4 = vpop.f32.mrf.mxu0 }
 0x134   :  { %v365_v5 = vpop.f32.mrf.mxu3  ;;  %v345_v6 = vpop.f32.mrf.mxu2 }
 0x135   :  { %v369_v12 = vadd.f32 %v365_v5, %v344_v10 }
 0x137   :  { %v431_v7 = vpop.f32.mrf.mxu1  ;;  %v400_v8 = vpop.f32.mrf.mxu0  ;;  %v402_v13 = vadd.f32 %v398_v4, %v369_v12 }
 0x139   :  { %v435_v16 = vadd.f32 %v431_v7, %v402_v13 }
 0x13c   :  { %v367_v9 = vpop.f32.mrf.mxu3 }
 0x13f   :  { %v433_v11 = vpop.f32.mrf.mxu1 }
 0x145   :  { %v464_v14 = vpop.f32.mrf.mxu2 }
 0x146   :  { %v468_v17 = vadd.f32 %v464_v14, %v435_v16 }
 0x147   :  { %v548_v15 = vpop.f32.mrf.mxu1 }
 0x14c   :  { %v492_v18 = vpop.f32.mrf.mxu3 }
 0x14d   :  { %v496_v19 = vadd.f32 %v492_v18, %v468_v17  ;;  %v466_v20 = vpop.f32.mrf.mxu2 }
 0x14e   :  { %v520_v21 = vpop.f32.mrf.mxu0 }
 0x14f   :  { %v524_v22 = vadd.f32 %v520_v21, %v496_v19  ;;  %v550_v23 = vpop.f32.mrf.mxu1 }
 0x151   :  { %v552_v24 = vadd.f32 %v548_v15, %v524_v22 }
 0x153   :  { %v553_v25 = vadd.f32 %v552_v24, %v282_v59 }
 0x154   :  { %v494_v26 = vpop.f32.mrf.mxu3 }
 0x155   :  { %v554_v27 = vmax.f32 %v553_v25, 0.0 }
 0x156   :  { %v522_v28 = vpop.f32.mrf.mxu0 }
 0x157   :  { %v564_v29 = vpack.c.bf16 %v554_v27, %v554_v27  ;;  %v555_v30 = vsel %vm286_vm3, %v554_v27, 0.0 }
 0x158   :  { %556 = vadd.xlane.f32.xlu2 %v555_v30 }
 0x159   :  { %566 = vst.msk [vmem:[#allocation2 + $0x4] sm:$0xf] %vm297_vm4, %v564_v29 }
 0x15a   :  { %582 = dma.vmem_to_hbm [thread:$0]  %s575_s13, 128, %s577_s15, [#allocation3], %s680_s16, %s680_s16, %s681_s17  }
 0x1a1   :  { %v289_v31 = vpop.xlane.xlu1 %288 }
 0x1a2   :  { %v290_v32 = vmul.f32 0.015625, %v289_v31  ;;  %300 = vst.msk [vmem:[%s905_s4] sm:$0xff] %vm299_vm5, %v289_v31 }
 0x1a4   :  { %v291_v33 = vsub.f32 %v285_v63, %v290_v32 }
 0x1a6   :  { %v292_v34 = vmul.f32 %v291_v33, %v291_v33 }
 0x1a8   :  { %v293_v35 = vsel %vm286_vm3, %v292_v34, 0.0 }
 0x1a9   :  { %294 = vadd.xlane.f32.xlu0 %v293_v35 }
 0x1cb   :  { %v557_v36 = vpop.xlane.xlu2 %556 }
 0x1cc   :  { %v558_v37 = vmul.f32 0.015625, %v557_v36  ;;  %641 = vst.msk [vmem:[%s905_s4 + $0x8] sm:$0xff] %vm299_vm5, %v557_v36 }
 0x1ce   :  { %v559_v38 = vsub.f32 %v554_v27, %v558_v37 }
 0x1d0   :  { %v560_v39 = vmul.f32 %v559_v38, %v559_v38 }
 0x1d2   :  { %v561_v40 = vsel %vm286_vm3, %v560_v39, 0.0 }
 0x1d3   :  { %562 = vadd.xlane.f32.xlu2 %v561_v40 }
 0x21c   :  { %v295_v41 = vpop.xlane.xlu0 %294 }
 0x21d   :  { %302 = vst.msk [vmem:[%s905_s4] sm:$0xff] %vm301_vm6, %v295_v41 }
 0x246   :  { %v563_v42 = vpop.xlane.xlu2 %562 }
 0x247   :  { %642 = vst.msk [vmem:[%s905_s4 + $0x8] sm:$0xff] %vm301_vm6, %v563_v42 }
 0x248   :  { %674 = dma.done.wait [#allocation3], 128  }
 0x249   :  { %675 = vsyncadd [#allocation3], 4294967168 }
 0x24a   :  { %591 = vsyncpa [#allocation3], 1 }

</bundles_post_ra>
